<compile_context>
chip_gen: v5e
topology: v5e:2x2
jax: 0.10.0
libtpu: 0.0.40
codegen_flags: <defaults>
</compile_context>

<pallas_src>
import functools

import jax
import jax.numpy as jnp
from jax.experimental import pallas as pl
from jax.experimental.pallas import tpu as pltpu


def cell_mlp_kernel(x_ref, w1_ref, b1_ref, w2_ref, b2_ref, out_ref):
    # ---- linear-0: cast x -> bf16 in-kernel (hidden under MXU), bf16 MXU, f32 acc
    x_lp = x_ref[...].astype(jnp.bfloat16)
    h = jnp.dot(x_lp, w1_ref[...], preferred_element_type=jnp.float32)
    # ---- bias + relu-1 (f32 epilogue; v5e has no bf16 VALU) ----
    h = jnp.maximum(h + b1_ref[...], 0.0)
    # ---- dropout-2: eval mode => identity ----
    # TODO(synk): training-mode dropout (pltpu.prng_seed + prng_random_bits mask)
    #             not emitted; nn.Dropout is identity in eval(), reproduced here.
    # ---- linear-3: keep h in f32, f32 MXU operands (K=128, N=32 -> negligible cost,
    #      avoids the extra bf16 re-quantization of the hidden activation) ----
    o = jnp.dot(h, w2_ref[...], preferred_element_type=jnp.float32)
    # ---- bias + relu-4 ----
    o = jnp.maximum(o + b2_ref[...], 0.0)
    out_ref[...] = o.astype(out_ref.dtype)


def prepare_cell_params(w1, b1, w2, b2):
    """One-time parameter prep, hoisted out of the per-call forward path.

    w1: (D_IN, HID)   b1: (HID,)     -- first Linear (weight pre-transposed)
    w2: (HID, D_OUT)  b2: (D_OUT,)   -- second Linear (weight pre-transposed)
    """
    return dict(
        w1=w1.astype(jnp.bfloat16),                # bf16 MXU operand, first dot
        b1=b1.reshape(1, -1).astype(jnp.float32),
        w2=w2.astype(jnp.float32),                 # second dot stays f32 (accuracy)
        b2=b2.reshape(1, -1).astype(jnp.float32),
    )


@functools.partial(jax.jit, static_argnames=("num_batch_tiles",))
def cell_forward(x, params, *, num_batch_tiles=1):
    """Pallas wrapper for Cell.forward.

    x               : raw module input (singleton non-batch dims are squeezed,
                      mirroring torch's x.squeeze() but keeping batch even if B==1).
    params          : output of prepare_cell_params (prepped once, reused every call).
    num_batch_tiles : 1 for v5e/v6e (single TensorCore -> single grid step);
                      2 on v7x so the "parallel" batch axis shards one tile per TC.
    """
    w1, b1, w2, b2 = params["w1"], params["b1"], params["w2"], params["b2"]

    # squeeze only non-batch singleton dims (safer than torch's blanket squeeze)
    squeeze_axes = tuple(i for i in range(1, x.ndim) if x.shape[i] == 1)
    x2d = jnp.squeeze(x, axis=squeeze_axes) if squeeze_axes else x
    assert x2d.ndim == 2, "expected (batch, features) after squeeze"

    B, D_in = x2d.shape
    HID = w1.shape[1]
    D_out = w2.shape[1]

    # pad batch only to the layout requirement (multiple of 8 per tile); with an
    # aligned batch this is a no-op and no post-kernel slice is needed either.
    align = 8 * num_batch_tiles
    B_pad = ((B + align - 1) // align) * align
    if B_pad != B:
        x2d = jnp.pad(x2d, ((0, B_pad - B), (0, 0)))
    TB = B_pad // num_batch_tiles

    cost = pl.CostEstimate(
        flops=2 * B_pad * (D_in * HID + HID * D_out),
        transcendentals=0,
        bytes_accessed=(B_pad * D_in * 4          # x (f32 in)
                        + w1.size * 2             # w1 (bf16)
                        + w2.size * 4             # w2 (f32)
                        + b1.size * 4 + b2.size * 4
                        + B_pad * D_out * 4),     # out (f32, unpadded columns)
    )

    out = pl.pallas_call(
        cell_mlp_kernel,
        out_shape=jax.ShapeDtypeStruct((B_pad, D_out), jnp.float32),
        grid=(num_batch_tiles,),
        in_specs=[
            pl.BlockSpec((TB, D_in), lambda i: (i, 0)),     # x: tiled over batch
            pl.BlockSpec((D_in, HID), lambda i: (0, 0)),    # w1: VMEM-resident
            pl.BlockSpec((1, HID), lambda i: (0, 0)),       # b1: VMEM-resident
            pl.BlockSpec((HID, D_out), lambda i: (0, 0)),   # w2: VMEM-resident
            pl.BlockSpec((1, D_out), lambda i: (0, 0)),     # b2: VMEM-resident
        ],
        out_specs=pl.BlockSpec((TB, D_out), lambda i: (i, 0)),
        compiler_params=pltpu.CompilerParams(
            dimension_semantics=("parallel",),   # shard batch tiles across TCs (v7x)
        ),
        cost_estimate=cost,
    )(x2d, w1, b1, w2, b2)

    return out if B_pad == B else out[:B]


def reference_forward(x, w1, b1, w2, b2):
    squeeze_axes = tuple(i for i in range(1, x.ndim) if x.shape[i] == 1)
    x2d = jnp.squeeze(x, axis=squeeze_axes) if squeeze_axes else x
    h = jnp.maximum(x2d @ w1 + b1, 0.0)        # linear -> relu
    # dropout (eval) = identity
    o = jnp.maximum(h @ w2 + b2, 0.0)          # linear -> relu
    return o


if __name__ == "__main__":
    # Module dims: input_cell_feature_dim = 64, hidden = 128, output = 32.
    # Small, 8-aligned batch so padding / trailing slice are no-ops.
    B, D_IN, HID, D_OUT = 64, 64, 128, 32

    key = jax.random.PRNGKey(0)
    kx, kw1, kb1, kw2, kb2 = jax.random.split(key, 5)

    # Input carries a singleton dim (batch, 1, features) -> squeezed in forward.
    x = jax.random.normal(kx, (B, 1, D_IN), dtype=jnp.float32)

    # Deterministic parameter init (uniform, PyTorch-Linear-style fan-in bound).
    bound1 = 1.0 / (D_IN ** 0.5)
    bound2 = 1.0 / (HID ** 0.5)
    w1 = jax.random.uniform(kw1, (D_IN, HID), jnp.float32, -bound1, bound1)
    b1 = jax.random.uniform(kb1, (HID,), jnp.float32, -bound1, bound1)
    w2 = jax.random.uniform(kw2, (HID, D_OUT), jnp.float32, -bound2, bound2)
    b2 = jax.random.uniform(kb2, (D_OUT,), jnp.float32, -bound2, bound2)

    # One-time parameter prep (hoisted out of the per-call path).
    params = prepare_cell_params(w1, b1, w2, b2)

    out = cell_forward(x, params)
    out = jax.block_until_ready(out)
    assert out.shape == (B, D_OUT)

    # Tight check against a reference that sees the same bf16-quantized first-dot
    # operands (x, w1); everything downstream is f32 in both paths.
    x_q = x.astype(jnp.bfloat16).astype(jnp.float32)
    w1_q = w1.astype(jnp.bfloat16).astype(jnp.float32)
    ref_q = reference_forward(x_q, w1_q, b1, w2, b2)
    assert jnp.allclose(out, ref_q, atol=2e-2, rtol=2e-2), "mismatch vs bf16 reference"

    # Loose check against the full-f32 module semantics.
    ref_f32 = reference_forward(x, w1, b1, w2, b2)
    assert jnp.allclose(out, ref_f32, atol=5e-2, rtol=5e-2), "mismatch vs f32 reference"

    print("KERNEL_OK")
</pallas_src>

<mosaic_0001>
module attributes {stable_mosaic.version = 11 : i64} {
  func.func @cell_mlp_kernel(%arg0: i32, %arg1: memref<64x64xf32, #tpu.memory_space<vmem>>, %arg2: memref<64x128xbf16, #tpu.memory_space<vmem>>, %arg3: memref<1x128xf32, #tpu.memory_space<vmem>>, %arg4: memref<128x32xf32, #tpu.memory_space<vmem>>, %arg5: memref<1x32xf32, #tpu.memory_space<vmem>>, %arg6: memref<64x32xf32, #tpu.memory_space<vmem>>) attributes {dimension_semantics = [#tpu.dimension_semantics<parallel>], iteration_bounds = array<i64: 1>, scalar_prefetch = 0 : i64, scratch_operands = 0 : i64, tpu.core_type = #tpu.core_type<tc>, window_params = [{transform_indices = @transform_0, window_bounds = array<i64: 64, 64>}, {pipeline_mode = #tpu.pipeline_mode<synchronous>, transform_indices = @transform_1, window_bounds = array<i64: 64, 128>}, {pipeline_mode = #tpu.pipeline_mode<synchronous>, transform_indices = @transform_2, window_bounds = array<i64: 1, 128>}, {pipeline_mode = #tpu.pipeline_mode<synchronous>, transform_indices = @transform_3, window_bounds = array<i64: 128, 32>}, {pipeline_mode = #tpu.pipeline_mode<synchronous>, transform_indices = @transform_4, window_bounds = array<i64: 1, 32>}, {transform_indices = @transform_5, window_bounds = array<i64: 64, 32>}]} {
    %c0 = arith.constant 0 : index
    %c0_0 = arith.constant 0 : index
    %0 = vector.load %arg1[%c0, %c0_0] : memref<64x64xf32, #tpu.memory_space<vmem>>, vector<64x64xf32>
    %1 = arith.truncf %0 : vector<64x64xf32> to vector<64x64xbf16>
    %c0_1 = arith.constant 0 : index
    %c0_2 = arith.constant 0 : index
    %2 = vector.load %arg2[%c0_1, %c0_2] : memref<64x128xbf16, #tpu.memory_space<vmem>>, vector<64x128xbf16>
    %cst = arith.constant dense<0.000000e+00> : vector<64x128xf32>
    %3 = tpu.matmul %1, %2, %cst {dimension_numbers = #tpu.dot_dimension_numbers<[1], [0], [0], [1], [0, 0, 1, 1], [], []>} : vector<64x64xbf16>, vector<64x128xbf16>, vector<64x128xf32> -> vector<64x128xf32>
    %c0_3 = arith.constant 0 : index
    %c0_4 = arith.constant 0 : index
    %4 = vector.load %arg3[%c0_3, %c0_4] : memref<1x128xf32, #tpu.memory_space<vmem>>, vector<1x128xf32>
    %5 = vector.broadcast %4 : vector<1x128xf32> to vector<64x128xf32>
    %6 = arith.addf %3, %5 : vector<64x128xf32>
    %cst_5 = arith.constant 0.000000e+00 : f32
    %7 = vector.broadcast %cst_5 : f32 to vector<64x128xf32>
    %8 = arith.maximumf %6, %7 : vector<64x128xf32>
    %c0_6 = arith.constant 0 : index
    %c0_7 = arith.constant 0 : index
    %9 = vector.load %arg4[%c0_6, %c0_7] : memref<128x32xf32, #tpu.memory_space<vmem>>, vector<128x32xf32>
    %cst_8 = arith.constant dense<0.000000e+00> : vector<64x32xf32>
    %10 = tpu.matmul %8, %9, %cst_8 {dimension_numbers = #tpu.dot_dimension_numbers<[1], [0], [0], [1], [0, 0, 1, 1], [], []>} : vector<64x128xf32>, vector<128x32xf32>, vector<64x32xf32> -> vector<64x32xf32>
    %c0_9 = arith.constant 0 : index
    %c0_10 = arith.constant 0 : index
    %11 = vector.load %arg5[%c0_9, %c0_10] : memref<1x32xf32, #tpu.memory_space<vmem>>, vector<1x32xf32>
    %12 = vector.broadcast %11 : vector<1x32xf32> to vector<64x32xf32>
    %13 = arith.addf %10, %12 : vector<64x32xf32>
    %cst_11 = arith.constant 0.000000e+00 : f32
    %14 = vector.broadcast %cst_11 : f32 to vector<64x32xf32>
    %15 = arith.maximumf %13, %14 : vector<64x32xf32>
    %c0_12 = arith.constant 0 : index
    %c0_13 = arith.constant 0 : index
    %16 = vector.load %arg6[%c0_12, %c0_13] : memref<64x32xf32, #tpu.memory_space<vmem>>, vector<64x32xf32>
    tpu.vector_store %arg6[%c0_12, %c0_13], %15 {strides = array<i32>} : memref<64x32xf32, #tpu.memory_space<vmem>>, vector<64x32xf32>,
    return
  }
  func.func @transform_0(%arg0: i32) -> (i32, i32) {
    %c0_i32 = arith.constant 0 : i32
    %c0_i32_0 = arith.constant 0 : i32
    return %arg0, %c0_i32 : i32, i32
  }
  func.func @transform_1(%arg0: i32) -> (i32, i32) {
    %c0_i32 = arith.constant 0 : i32
    %c0_i32_0 = arith.constant 0 : i32
    %c0_i32_1 = arith.constant 0 : i32
    return %c0_i32, %c0_i32_0 : i32, i32
  }
  func.func @transform_2(%arg0: i32) -> (i32, i32) {
    %c0_i32 = arith.constant 0 : i32
    %c0_i32_0 = arith.constant 0 : i32
    %c0_i32_1 = arith.constant 0 : i32
    return %c0_i32, %c0_i32_0 : i32, i32
  }
  func.func @transform_3(%arg0: i32) -> (i32, i32) {
    %c0_i32 = arith.constant 0 : i32
    %c0_i32_0 = arith.constant 0 : i32
    %c0_i32_1 = arith.constant 0 : i32
    return %c0_i32, %c0_i32_0 : i32, i32
  }
  func.func @transform_4(%arg0: i32) -> (i32, i32) {
    %c0_i32 = arith.constant 0 : i32
    %c0_i32_0 = arith.constant 0 : i32
    %c0_i32_1 = arith.constant 0 : i32
    return %c0_i32, %c0_i32_0 : i32, i32
  }
  func.func @transform_5(%arg0: i32) -> (i32, i32) {
    %c0_i32 = arith.constant 0 : i32
    %c0_i32_0 = arith.constant 0 : i32
    return %arg0, %c0_i32 : i32, i32
  }
}

</mosaic_0001>

<bundles_post_ra>
// kernel: cell_forward.1
= control target key start
LH: loop header
LB: loop body
LE: loop exit
PB: predicated region body
PF: predicated region fallthrough
CT: control target
= control target key end

     0   :  { %vm69_vm0 = vcmask 523264   ;;  %vm188_vm1 = vcmask 261120   ;;  %s419_s1 = inlined_call_operand.vmem [shape: bf16[64,128], index: 1, kind: input, shape index: {}]   ;;  %s420_s2 = inlined_call_operand.vmem [shape: f32[1,128], index: 2, kind: input, shape index: {}]   ;;  %s421_s0 = inlined_call_operand.vmem [shape: f32[64,64], index: 0, kind: input, shape index: {}]   ;;  %s422_s3 = inlined_call_operand.vmem [shape: f32[128,32], index: 3, kind: input, shape index: {}]   ;;  %s423_s4 = inlined_call_operand.vmem [shape: f32[1,32], index: 4, kind: input, shape index: {}]   ;;  %s424_s5 = inlined_call_operand.vmem [shape: f32[64,32], index: 5, kind: output, shape index: {}]  }
   0x1   :  { %v224_v0 = vld [vmem:[%s419_s1 + $0x18] sm:$0xff]  ;;  %v223_v1 = vld [vmem:[%s419_s1 + $0x10] sm:$0xff]  ;;  %v222_v2 = vld [vmem:[%s419_s1 + $0x8] sm:$0xff] }
   0x2   :  { %86 = vmatpush.bf16.msra.mxu0 %v224_v0  ;;  %225 = vmatpush.bf16.msra.mxu3 %v224_v0  ;;  %v221_v3 = vld [vmem:[%s419_s1] sm:$0xff]  ;;  %v22_v5 = vld [vmem:[%s421_s0 + $0x8] sm:$0xff]  ;;  %v23_v6 = vld [vmem:[%s421_s0 + $0x10] sm:$0xff] }
   0x3   :  { %v21_v4 = vld [vmem:[%s421_s0] sm:$0xff]  ;;  %v24_v7 = vld [vmem:[%s421_s0 + $0x18] sm:$0xff]  ;;  %v133_v11 = vld [vmem:[%s422_s3 + $0x70] sm:$0xff] }
   0x4   :  { %v29_v8 = vpack.c.bf16 %v22_v5, %v21_v4  ;;  %v30_v9 = vpack.c.bf16 %v24_v7, %v23_v6  ;;  %v134_v10 = vld [vmem:[%s422_s3 + $0x78] sm:$0xff]  ;;  %v132_v12 = vld [vmem:[%s422_s3 + $0x68] sm:$0xff]  ;;  %v131_v13 = vld [vmem:[%s422_s3 + $0x60] sm:$0xff] }
   0x5   :  { %229 = vmatpush.msra.mxu1 %v134_v10  ;;  %230 = vmatpush.msra.mxu2 %v134_v10  ;;  %v130_v14 = vld [vmem:[%s422_s3 + $0x58] sm:$0xff]  ;;  %v129_v15 = vld [vmem:[%s422_s3 + $0x50] sm:$0xff]  ;;  %v25_v16 = vld [vmem:[%s421_s0 + $0x20] sm:$0xff] }
   0x6   :  { %87 = vmatpush.bf16.msra.mxu0 %v223_v1  ;;  %226 = vmatpush.bf16.msra.mxu3 %v223_v1  ;;  %v26_v17 = vld [vmem:[%s421_s0 + $0x28] sm:$0xff]  ;;  %v127_v20 = vld [vmem:[%s422_s3 + $0x40] sm:$0xff]  ;;  %v126_v21 = vld [vmem:[%s422_s3 + $0x38] sm:$0xff] }
   0x7   :  { %231 = vmatpush.msra.mxu1 %v133_v11  ;;  %232 = vmatpush.msra.mxu2 %v133_v11  ;;  %v128_v18 = vld [vmem:[%s422_s3 + $0x48] sm:$0xff]  ;;  %v31_v19 = vpack.c.bf16 %v26_v17, %v25_v16  ;;  %v27_v22 = vld [vmem:[%s421_s0 + $0x30] sm:$0xff]  ;;  %v28_v23 = vld [vmem:[%s421_s0 + $0x38] sm:$0xff] }
   0x8   :  { %v32_v24 = vpack.c.bf16 %v28_v23, %v27_v22  ;;  %v125_v25 = vld [vmem:[%s422_s3 + $0x30] sm:$0xff]  ;;  %v124_v26 = vld [vmem:[%s422_s3 + $0x28] sm:$0xff]  ;;  %v123_v27 = vld [vmem:[%s422_s3 + $0x20] sm:$0xff] }
   0x9   :  { %233 = vmatpush.msra.mxu1 %v132_v12  ;;  %234 = vmatpush.msra.mxu2 %v132_v12  ;;  %v122_v28 = vld [vmem:[%s422_s3 + $0x18] sm:$0xff]  ;;  %v121_v29 = vld [vmem:[%s422_s3 + $0x10] sm:$0xff]  ;;  %v120_v30 = vld [vmem:[%s422_s3 + $0x8] sm:$0xff] }
   0xa   :  { %88 = vmatpush.bf16.msra.mxu0 %v222_v2  ;;  %227 = vmatpush.bf16.msra.mxu3 %v222_v2  ;;  %v119_v31 = vld [vmem:[%s422_s3] sm:$0xff] }
   0xb   :  { %235 = vmatpush.msra.mxu1 %v131_v13  ;;  %236 = vmatpush.msra.mxu2 %v131_v13  ;;  %v261_v32 = vld [vmem:[%s420_s2] ss:$0 sm:$0xff] }
   0xc   :  { %v262_v57 = vld [vmem:[%s423_s4] ss:$0 sm:$0xff] }
   0xd   :  { %237 = vmatpush.msra.mxu1 %v130_v14  ;;  %238 = vmatpush.msra.mxu2 %v130_v14 }
   0xe   :  { %89 = vmatpush.bf16.msra.mxu0 %v221_v3  ;;  %228 = vmatpush.bf16.msra.mxu3 %v221_v3 }
   0xf   :  { %239 = vmatpush.msra.mxu1 %v129_v15  ;;  %240 = vmatpush.msra.mxu2 %v129_v15 }
  0x11   :  { %217 = vmatmul.msk.bf16.vlgmr.msra.gmra.mxu0 %vm69_vm0, %v29_v8  ;;  %218 = vmatmul.msk.bf16.vlgmr.msra.gmra.mxu3 %vm69_vm0, %v30_v9 }
  0x12   :  { %139 = vmatpush.msrb.mxu0 %v134_v10  ;;  %241 = vmatpush.msra.mxu1 %v128_v18 }
  0x13   :  { %242 = vmatpush.msra.mxu2 %v128_v18 }
  0x14   :  { %140 = vmatpush.msrb.mxu0 %v133_v11  ;;  %243 = vmatpush.msra.mxu1 %v127_v20 }
  0x15   :  { %244 = vmatpush.msra.mxu2 %v127_v20 }
  0x16   :  { %141 = vmatpush.msrb.mxu0 %v132_v12  ;;  %245 = vmatpush.msra.mxu1 %v126_v21 }
  0x17   :  { %246 = vmatpush.msra.mxu2 %v126_v21 }
  0x18   :  { %142 = vmatpush.msrb.mxu0 %v131_v13  ;;  %247 = vmatpush.msra.mxu1 %v125_v25 }
  0x19   :  { %248 = vmatpush.msra.mxu2 %v125_v25 }
  0x1a   :  { %143 = vmatpush.msrb.mxu0 %v130_v14  ;;  %249 = vmatpush.msra.mxu1 %v124_v26 }
  0x1b   :  { %250 = vmatpush.msra.mxu2 %v124_v26 }
  0x1c   :  { %144 = vmatpush.msrb.mxu0 %v129_v15  ;;  %251 = vmatpush.msra.mxu1 %v123_v27 }
  0x1d   :  { %252 = vmatpush.msra.mxu2 %v123_v27 }
  0x1e   :  { %145 = vmatpush.msrb.mxu0 %v128_v18  ;;  %253 = vmatpush.msra.mxu1 %v122_v28 }
  0x1f   :  { %254 = vmatpush.msra.mxu2 %v122_v28 }
  0x20   :  { %146 = vmatpush.msrb.mxu0 %v127_v20  ;;  %255 = vmatpush.msra.mxu1 %v121_v29 }
  0x21   :  { %219 = vmatmul.msk.bf16.gmra.mxu3 %vm69_vm0, %v31_v19  ;;  %256 = vmatpush.msra.mxu2 %v121_v29 }
  0x22   :  { %147 = vmatpush.msrb.mxu0 %v126_v21  ;;  %257 = vmatpush.msra.mxu1 %v120_v30 }
  0x23   :  { %258 = vmatpush.msra.mxu2 %v120_v30 }
  0x24   :  { %148 = vmatpush.msrb.mxu0 %v125_v25  ;;  %259 = vmatpush.msra.mxu1 %v119_v31 }
  0x25   :  { %260 = vmatpush.msra.mxu2 %v119_v31 }
  0x26   :  { %149 = vmatpush.msrb.mxu0 %v124_v26 }
  0x28   :  { %150 = vmatpush.msrb.mxu0 %v123_v27 }
  0x2a   :  { %151 = vmatpush.msrb.mxu0 %v122_v28 }
  0x2c   :  { %152 = vmatpush.msrb.mxu0 %v121_v29 }
  0x2e   :  { %153 = vmatpush.msrb.mxu0 %v120_v30 }
  0x30   :  { %154 = vmatpush.msrb.mxu0 %v119_v31 }
  0x31   :  { %220 = vmatmul.msk.bf16.gmra.mxu3 %vm69_vm0, %v32_v24 }
  0x8e   :  { %v91_v33 = vpop.f32.mrf.mxu0 }
  0x8f   :  { %v92_v34 = vadd.f32 %v261_v32, %v91_v33 }
  0x91   :  { %v111_v35 = vmax.f32 %v92_v34, 0.0 }
  0x93   :  { %155 = vmatmul.f32.vlgmr.msrb.gmra.mxu0 %v111_v35 }
  0x94   :  { %v96_v36 = vpop.f32.mrf.mxu3 }
  0x95   :  { %v97_v41 = vadd.f32 %v261_v32, %v96_v36 }
  0x96   :  { %v93_v37 = vpop.f32.mrf.mxu0 }
  0x97   :  { %v94_v38 = vadd.f32 %v261_v32, %v93_v37  ;;  %v113_v42 = vmax.f32 %v97_v41, 0.0 }
  0x99   :  { %v112_v39 = vmax.f32 %v94_v38, 0.0 }
  0x9b   :  { %158 = vmatmul.f32.vlgmr.msra.gmra.mxu1 %v112_v39 }
  0x9c   :  { %v98_v40 = vpop.f32.mrf.mxu3 }
  0x9d   :  { %v99_v44 = vadd.f32 %v261_v32, %v98_v40 }
  0x9f   :  { %v114_v47 = vmax.f32 %v99_v44, 0.0 }
  0xa3   :  { %161 = vmatmul.f32.gmra.mxu1 %v113_v42 }
  0xa4   :  { %v101_v43 = vpop.f32.mrf.mxu3 }
  0xa5   :  { %v102_v45 = vadd.f32 %v261_v32, %v101_v43 }
  0xa7   :  { %v115_v46 = vmax.f32 %v102_v45, 0.0 }
  0xa9   :  { %167 = vmatmul.f32.vlgmr.msra.gmra.mxu2 %v115_v46 }
  0xab   :  { %164 = vmatmul.f32.gmra.mxu1 %v114_v47 }
  0xac   :  { %v103_v48 = vpop.f32.mrf.mxu3 }
  0xad   :  { %v104_v49 = vadd.f32 %v261_v32, %v103_v48 }
  0xaf   :  { %v116_v50 = vmax.f32 %v104_v49, 0.0 }
  0xb1   :  { %170 = vmatmul.f32.gmra.mxu2 %v116_v50 }
  0xb4   :  { %v106_v51 = vpop.f32.mrf.mxu3 }
  0xb5   :  { %v107_v52 = vadd.f32 %v261_v32, %v106_v51 }
  0xb7   :  { %v117_v53 = vmax.f32 %v107_v52, 0.0 }
  0xb9   :  { %173 = vmatmul.f32.gmra.mxu2 %v117_v53 }
  0xbc   :  { %v108_v54 = vpop.f32.mrf.mxu3 }
  0xbd   :  { %v109_v55 = vadd.f32 %v261_v32, %v108_v54 }
  0xbf   :  { %v118_v56 = vmax.f32 %v109_v55, 0.0 }
  0xc1   :  { %176 = vmatmul.f32.gmra.mxu2 %v118_v56 }
 0x110   :  { %v156_v58 = vpop.f32.mrf.mxu0 }
 0x111   :  { %v157_v59 = vadd.f32 %v262_v57, %v156_v58 }
 0x113   :  { %v180_v60 = vmax.f32 %v157_v59, 0.0 }
 0x115   :  { %189 = vst.msk [vmem:[%s424_s5] sm:$0xff] %vm188_vm1, %v180_v60 }
 0x118   :  { %v159_v61 = vpop.f32.mrf.mxu1 }
 0x119   :  { %v160_v62 = vadd.f32 %v262_v57, %v159_v61 }
 0x11b   :  { %v181_v63 = vmax.f32 %v160_v62, 0.0 }
 0x11d   :  { %190 = vst.msk [vmem:[%s424_s5 + $0x8] sm:$0xff] %vm188_vm1, %v181_v63 }
 0x120   :  { %v162_v0 = vpop.f32.mrf.mxu1 }
 0x121   :  { %v163_v1 = vadd.f32 %v262_v57, %v162_v0 }
 0x123   :  { %v182_v2 = vmax.f32 %v163_v1, 0.0 }
 0x125   :  { %191 = vst.msk [vmem:[%s424_s5 + $0x10] sm:$0xff] %vm188_vm1, %v182_v2 }
 0x128   :  { %v165_v3 = vpop.f32.mrf.mxu1 }
 0x129   :  { %v166_v4 = vadd.f32 %v262_v57, %v165_v3 }
 0x12b   :  { %v183_v5 = vmax.f32 %v166_v4, 0.0 }
 0x12c   :  { %v168_v6 = vpop.f32.mrf.mxu2 }
 0x12d   :  { %192 = vst.msk [vmem:[%s424_s5 + $0x18] sm:$0xff] %vm188_vm1, %v183_v5  ;;  %v169_v7 = vadd.f32 %v262_v57, %v168_v6 }
 0x12f   :  { %v184_v8 = vmax.f32 %v169_v7, 0.0 }
 0x131   :  { %193 = vst.msk [vmem:[%s424_s5 + $0x20] sm:$0xff] %vm188_vm1, %v184_v8 }
 0x134   :  { %v171_v9 = vpop.f32.mrf.mxu2 }
 0x135   :  { %v172_v10 = vadd.f32 %v262_v57, %v171_v9 }
 0x137   :  { %v185_v11 = vmax.f32 %v172_v10, 0.0 }
 0x139   :  { %194 = vst.msk [vmem:[%s424_s5 + $0x28] sm:$0xff] %vm188_vm1, %v185_v11 }
 0x13c   :  { %v174_v12 = vpop.f32.mrf.mxu2 }
 0x13d   :  { %v175_v13 = vadd.f32 %v262_v57, %v174_v12 }
 0x13f   :  { %v186_v14 = vmax.f32 %v175_v13, 0.0 }
 0x141   :  { %195 = vst.msk [vmem:[%s424_s5 + $0x30] sm:$0xff] %vm188_vm1, %v186_v14 }
 0x144   :  { %v177_v15 = vpop.f32.mrf.mxu2 }
 0x145   :  { %v178_v16 = vadd.f32 %v262_v57, %v177_v15 }
 0x147   :  { %v187_v17 = vmax.f32 %v178_v16, 0.0 }
 0x149   :  { %196 = vst.msk [vmem:[%s424_s5 + $0x38] sm:$0xff] %vm188_vm1, %v187_v17 }

</bundles_post_ra>
